<compile_context>
chip_gen: v6e
topology: v6e:2x2x1
jax: 0.10.0
libtpu: 0.0.40
codegen_flags: <defaults>
</compile_context>

<pallas_src>
import functools
import math

import jax
import jax.numpy as jnp
from jax.experimental import pallas as pl
from jax.experimental.pallas import tpu as pltpu

_LANE = 128     # TPU lane width: the weight's expert dim is padded to this.
_SUBLANE = 8    # f32 sublane quantum: batch tile must be a multiple of this.


def _sgn_kernel(x_ref, n_ref, w_ref, o_ref, *, num_experts):
    """One batch tile: out = noise * softplus(x @ W_pad)[:, :num_experts]."""
    w = w_ref[...]                          # (D, E_pad), pre-cast at init time
    x = x_ref[...].astype(w.dtype)          # (tb, D)
    # (tb, D) @ (D, E_pad) -> (tb, E_pad) on the MXU, f32 accumulation.
    z = jnp.dot(x, w, preferred_element_type=jnp.float32)
    # Drop the padded expert lanes before the elementwise math / store.
    z = z[:, :num_experts]                  # (tb, E) static in-register slice
    # Numerically stable softplus: log(1+exp(z)) = max(z,0) + log1p(exp(-|z|)).
    sp = jnp.maximum(z, 0.0) + jnp.log1p(jnp.exp(-jnp.abs(z)))
    o_ref[...] = (n_ref[...].astype(jnp.float32) * sp).astype(o_ref.dtype)


def prepare_gate_weight(weight, matmul_dtype=jnp.float32):
    """One-time (init-time) weight prep, outside the hot path.

    weight: (num_experts, input_dim), PyTorch nn.Linear layout.
    Returns (input_dim, E_pad): transposed (no per-call transpose in the
    kernel), zero-padded so the lane dim is a multiple of 128, and pre-cast to
    the matmul dtype (no per-grid-step cast in the kernel).
    """
    e, d = weight.shape
    e_pad = max(_LANE, ((e + _LANE - 1) // _LANE) * _LANE)
    w = jnp.asarray(weight, dtype=matmul_dtype)
    if e_pad != e:
        w = jnp.pad(w, ((0, e_pad - e), (0, 0)))
    return w.T  # (D, E_pad)


@functools.partial(jax.jit, static_argnames=("num_experts", "block_b"))
def sparsely_gated_noise(x, weight_padded, noise, *, num_experts, block_b=1024):
    """x: (B, D); weight_padded: (D, E_pad) from prepare_gate_weight;
    noise: (B, num_experts) i.i.d. N(0,1).  Returns (B, num_experts)."""
    B, D = x.shape
    D_w, E_pad = weight_padded.shape
    E = num_experts
    assert D == D_w, (D, D_w)
    assert E_pad % _LANE == 0 and E <= E_pad
    assert noise.shape == (B, E), noise.shape

    # ---- batch tile sizing -------------------------------------------------
    # Conservative VMEM budget (half the 32 MiB scoped limit -> plenty of
    # headroom on v7x's 64 MiB/TC and on v5e/v6e):
    #   2 pipeline buffers * (x + noise + out) f32 tiles + 2 * resident weight.
    vmem_budget = 16 * 1024 * 1024
    weight_bytes = 2 * D * E_pad * 4
    row_bytes = 4 * (D + 2 * E)
    tb_budget = max(_SUBLANE, (vmem_budget - weight_bytes) // (2 * row_bytes))
    # Keep >= 4 grid steps when B allows it so the "parallel" axis can shard
    # across both TensorCores on v7x.
    tb_parallel = max(_SUBLANE, ((B // 4) // _SUBLANE) * _SUBLANE)

    if B <= _SUBLANE:
        tb = B                                  # block == full dim (legal)
    else:
        tb = min(block_b, int(tb_budget), tb_parallel,
                 max(_SUBLANE, (B // _SUBLANE) * _SUBLANE))
        tb = max(_SUBLANE, (tb // _SUBLANE) * _SUBLANE)

    grid = (pl.cdiv(B, tb),)                    # partial tail block handled by Pallas

    return pl.pallas_call(
        functools.partial(_sgn_kernel, num_experts=E),
        out_shape=jax.ShapeDtypeStruct((B, E), x.dtype),
        grid_spec=pltpu.PrefetchScalarGridSpec(
            num_scalar_prefetch=0,
            grid=grid,
            in_specs=[
                # x and noise tiles march along the batch; the weight block is
                # constant across the grid -> resident in VMEM, DMA'd once.
                pl.BlockSpec((tb, D), lambda i: (i, 0)),
                pl.BlockSpec((tb, E), lambda i: (i, 0)),
                pl.BlockSpec((D, E_pad), lambda i: (0, 0)),
            ],
            out_specs=pl.BlockSpec((tb, E), lambda i: (i, 0)),
        ),
        compiler_params=pltpu.CompilerParams(
            # Independent batch tiles -> megacore sharding on v7x.
            dimension_semantics=("parallel",),
            vmem_limit_bytes=32 * 1024 * 1024,
        ),
    )(x, noise, weight_padded)


if __name__ == "__main__":
    # Shapes consistent with the module: a gate over 16 experts on 64-d inputs,
    # enough rows (512) to exercise the batch-tiled grid (4 steps of 128).
    batch, input_dim, num_experts = 512, 64, 16

    key = jax.random.PRNGKey(0)
    k_x, k_w, k_n = jax.random.split(key, 3)

    x = jax.random.normal(k_x, (batch, input_dim), dtype=jnp.float32)
    # Weight init matching the module's _init_weights (std=0.01), scaled up a
    # bit so softplus values spread out and the check below is meaningful.
    weight = (1.0 / math.sqrt(input_dim)) * jax.random.normal(
        k_w, (num_experts, input_dim), dtype=jnp.float32)
    # Standard-normal stream (the torch.randn of the reference forward).
    noise = jax.random.normal(k_n, (batch, num_experts), dtype=jnp.float32)

    # One-time, init-style weight preparation (transpose + lane pad + cast).
    w_padded = prepare_gate_weight(weight)

    out = sparsely_gated_noise(x, w_padded, noise, num_experts=num_experts)
    jax.block_until_ready(out)

    # Pure-JAX reference of the forward pass (same noise stream -> exact check).
    ref = noise * jax.nn.softplus(x @ weight.T)

    assert out.shape == (batch, num_experts), out.shape
    assert bool(jnp.all(jnp.isfinite(out)))
    err = float(jnp.max(jnp.abs(out - ref)))
    assert jnp.allclose(out, ref, rtol=1e-5, atol=1e-5), err

    print("KERNEL_OK")
</pallas_src>

<mosaic_0001>
module attributes {stable_mosaic.version = 11 : i64} {
  func.func @_sgn_kernel(%arg0: i32, %arg1: memref<128x64xf32, #tpu.memory_space<vmem>>, %arg2: memref<128x16xf32, #tpu.memory_space<vmem>>, %arg3: memref<64x128xf32, #tpu.memory_space<vmem>>, %arg4: memref<128x16xf32, #tpu.memory_space<vmem>>) attributes {dimension_semantics = [#tpu.dimension_semantics<parallel>], iteration_bounds = array<i64: 4>, scalar_prefetch = 0 : i64, scratch_operands = 0 : i64, tpu.core_type = #tpu.core_type<tc>, window_params = [{transform_indices = @transform_0, window_bounds = array<i64: 128, 64>}, {transform_indices = @transform_1, window_bounds = array<i64: 128, 16>}, {pipeline_mode = #tpu.pipeline_mode<synchronous>, transform_indices = @transform_2, window_bounds = array<i64: 64, 128>}, {transform_indices = @transform_3, window_bounds = array<i64: 128, 16>}]} {
    %c0 = arith.constant 0 : index
    %c0_0 = arith.constant 0 : index
    %0 = vector.load %arg3[%c0, %c0_0] : memref<64x128xf32, #tpu.memory_space<vmem>>, vector<64x128xf32>
    %c0_1 = arith.constant 0 : index
    %c0_2 = arith.constant 0 : index
    %1 = vector.load %arg1[%c0_1, %c0_2] : memref<128x64xf32, #tpu.memory_space<vmem>>, vector<128x64xf32>
    %cst = arith.constant dense<0.000000e+00> : vector<128x128xf32>
    %2 = tpu.matmul %1, %0, %cst {dimension_numbers = #tpu.dot_dimension_numbers<[1], [0], [0], [1], [0, 0, 1, 1], [], []>} : vector<128x64xf32>, vector<64x128xf32>, vector<128x128xf32> -> vector<128x128xf32>
    %3 = vector.extract_strided_slice %2 {offsets = [0, 0], sizes = [128, 16], strides = [1, 1]} : vector<128x128xf32> to vector<128x16xf32>
    %cst_3 = arith.constant 0.000000e+00 : f32
    %4 = vector.broadcast %cst_3 : f32 to vector<128x16xf32>
    %5 = arith.maximumf %3, %4 : vector<128x16xf32>
    %6 = math.absf %3 : vector<128x16xf32>
    %cst_4 = arith.constant 0.000000e+00 : f32
    %7 = vector.broadcast %cst_4 : f32 to vector<128x16xf32>
    %8 = arith.subf %7, %6 : vector<128x16xf32>
    %9 = math.exp %8 : vector<128x16xf32>
    %10 = math.log1p %9 : vector<128x16xf32>
    %11 = arith.addf %5, %10 : vector<128x16xf32>
    %c0_5 = arith.constant 0 : index
    %c0_6 = arith.constant 0 : index
    %12 = vector.load %arg2[%c0_5, %c0_6] : memref<128x16xf32, #tpu.memory_space<vmem>>, vector<128x16xf32>
    %13 = arith.mulf %12, %11 : vector<128x16xf32>
    %c0_7 = arith.constant 0 : index
    %c0_8 = arith.constant 0 : index
    %14 = vector.load %arg4[%c0_7, %c0_8] : memref<128x16xf32, #tpu.memory_space<vmem>>, vector<128x16xf32>
    tpu.vector_store %arg4[%c0_7, %c0_8], %13 {strides = array<i32>} : memref<128x16xf32, #tpu.memory_space<vmem>>, vector<128x16xf32>,
    return
  }
  func.func @transform_0(%arg0: i32) -> (i32, i32) {
    %c0_i32 = arith.constant 0 : i32
    %c0_i32_0 = arith.constant 0 : i32
    return %arg0, %c0_i32 : i32, i32
  }
  func.func @transform_1(%arg0: i32) -> (i32, i32) {
    %c0_i32 = arith.constant 0 : i32
    %c0_i32_0 = arith.constant 0 : i32
    return %arg0, %c0_i32 : i32, i32
  }
  func.func @transform_2(%arg0: i32) -> (i32, i32) {
    %c0_i32 = arith.constant 0 : i32
    %c0_i32_0 = arith.constant 0 : i32
    %c0_i32_1 = arith.constant 0 : i32
    return %c0_i32, %c0_i32_0 : i32, i32
  }
  func.func @transform_3(%arg0: i32) -> (i32, i32) {
    %c0_i32 = arith.constant 0 : i32
    %c0_i32_0 = arith.constant 0 : i32
    return %arg0, %c0_i32 : i32, i32
  }
}

</mosaic_0001>

<bundles_post_ra>
// kernel: sparsely_gated_noise.1
= control target key start
LH: loop header
LB: loop body
LE: loop exit
PB: predicated region body
PF: predicated region fallthrough
CT: control target
= control target key end

     0   :  { %s980_s12 = smov 0   ;;  %s1321_s0 = inlined_call_operand.vmem [shape: f32[512,64], index: 0, kind: input, shape index: {}]   ;;  %s1322_s1 = inlined_call_operand.vmem [shape: f32[512,16], index: 1, kind: input, shape index: {}]   ;;  %s1323_s2 = inlined_call_operand.vmem [shape: f32[64,128], index: 2, kind: input, shape index: {}]   ;;  %s1324_s3 = inlined_call_operand.vmem [shape: f32[512,16], index: 3, kind: output, shape index: {}]  }
   0x1 LB: > { %s771_s13 = sadd.s32 4294967295, %s958_s12   ;;  %p775_p0 = scmp.ge.s32.totalorder %s958_s12, 1  ;;  %s958_s12 = sphi %s980_s12, %s13_s12  }
   0x2   : > { %p149_p1 = scmp.lt.s32.totalorder %s958_s12, 5 }
   0x4   : > { %p150_p2 = pnand %p775_p0, %p149_p1 }
   0x5   : > { %s776_s18 = sshll.u32 (!%p150_p2), %s771_s13, 4 }
   0x6   : > { %153 = sbr.rel (%p150_p2) target bundleno = 315 (0x13b), region = 32  ;;  %p179_p3 = scmp.lt.s32.totalorder (!%p150_p2), %s776_s18, 63 }
   0xb   : > { %v203_v0 = vld [vmem:[%s1323_s2 + $0x38] sm:$0xff]  ;;  %v202_v1 = vld [vmem:[%s1323_s2 + $0x30] sm:$0xff]  ;;  %v201_v2 = vld [vmem:[%s1323_s2 + $0x28] sm:$0xff]  ;;  %s1346_s18 = smov (!%p179_p3, %s776_s18), 63  ;;  %vm220_vm0 = vcmask 523264   ;;  %vm686_vm3 = vcmask 130048  }
   0xc   : > { %824 = vmatprep.subr.mxu0 %v203_v0  ;;  %864 = vmatprep.subr.mxu1 %v203_v0  ;;  %v200_v3 = vld [vmem:[%s1323_s2 + $0x20] sm:$0xff]  ;;  %v199_v4 = vld [vmem:[%s1323_s2 + $0x18] sm:$0xff]  ;;  %v198_v5 = vld [vmem:[%s1323_s2 + $0x10] sm:$0xff]  ;;  %s1006_s27 = sshll.u32 %s1346_s18, 3 }
   0xd   : > { %825 = vmatpush3.msra.mxu0 %v203_v0  ;;  %872 = vmatpush3.msra.mxu1 %v203_v0  ;;  %v197_v6 = vld [vmem:[%s1323_s2 + $0x8] sm:$0xff]  ;;  %s1015_s5 = scalar_lea.vmem %s1321_s0, %s1006_s27  ;;  %v196_v7 = vld [vmem:[%s1323_s2] sm:$0xff]  ;;  %s1160_s10 = scalar_lea.vmem %s1322_s1, %s1006_s27 }
   0xe   : > { %826 = vmatprep.subr.mxu0 %v202_v1  ;;  %865 = vmatprep.subr.mxu1 %v202_v1  ;;  %v204_v8 = vld [vmem:[%s1015_s5] sm:$0xff]  ;;  %v205_v10 = vld [vmem:[%s1015_s5 + $0x8] sm:$0xff]  ;;  %v206_v12 = vld [vmem:[%s1015_s5 + $0x10] sm:$0xff]  ;;  %s1198_s14 = scalar_lea.vmem %s1324_s3, %s1006_s27 }
   0xf   : > { %827 = vmatpush3.msra.mxu0 %v202_v1  ;;  %873 = vmatpush3.msra.mxu1 %v202_v1  ;;  %v212_v9 = vld [vmem:[%s1015_s5 + $0x40] sm:$0xff]  ;;  %v213_v11 = vld [vmem:[%s1015_s5 + $0x48] sm:$0xff]  ;;  %v214_v13 = vld [vmem:[%s1015_s5 + $0x50] sm:$0xff] }
  0x10   : > { %828 = vmatprep.subr.mxu0 %v201_v2  ;;  %866 = vmatprep.subr.mxu1 %v201_v2  ;;  %v207_v14 = vld [vmem:[%s1015_s5 + $0x18] sm:$0xff]  ;;  %v208_v16 = vld [vmem:[%s1015_s5 + $0x20] sm:$0xff]  ;;  %v209_v18 = vld [vmem:[%s1015_s5 + $0x28] sm:$0xff] }
  0x11   : > { %829 = vmatpush3.msra.mxu0 %v201_v2  ;;  %874 = vmatpush3.msra.mxu1 %v201_v2  ;;  %v215_v15 = vld [vmem:[%s1015_s5 + $0x58] sm:$0xff]  ;;  %v216_v17 = vld [vmem:[%s1015_s5 + $0x60] sm:$0xff]  ;;  %v217_v19 = vld [vmem:[%s1015_s5 + $0x68] sm:$0xff] }
  0x12   : > { %830 = vmatprep.subr.mxu0 %v200_v3  ;;  %867 = vmatprep.subr.mxu1 %v200_v3  ;;  %v210_v20 = vld [vmem:[%s1015_s5 + $0x30] sm:$0xff]  ;;  %v211_v22 = vld [vmem:[%s1015_s5 + $0x38] sm:$0xff] }
  0x13   : > { %831 = vmatpush3.msra.mxu0 %v200_v3  ;;  %875 = vmatpush3.msra.mxu1 %v200_v3  ;;  %v218_v21 = vld [vmem:[%s1015_s5 + $0x70] sm:$0xff]  ;;  %v219_v23 = vld [vmem:[%s1015_s5 + $0x78] sm:$0xff] }
  0x14   : > { %832 = vmatprep.subr.mxu0 %v199_v4  ;;  %868 = vmatprep.subr.mxu1 %v199_v4 }
  0x15   : > { %833 = vmatpush3.msra.mxu0 %v199_v4  ;;  %876 = vmatpush3.msra.mxu1 %v199_v4 }
  0x16   : > { %834 = vmatprep.subr.mxu0 %v198_v5  ;;  %869 = vmatprep.subr.mxu1 %v198_v5 }
  0x17   : > { %835 = vmatpush3.msra.mxu0 %v198_v5  ;;  %877 = vmatpush3.msra.mxu1 %v198_v5 }
  0x18   : > { %836 = vmatprep.subr.mxu0 %v197_v6  ;;  %870 = vmatprep.subr.mxu1 %v197_v6 }
  0x19   : > { %837 = vmatpush3.msra.mxu0 %v197_v6  ;;  %878 = vmatpush3.msra.mxu1 %v197_v6 }
  0x1a   : > { %838 = vmatprep.subr.mxu0 %v196_v7  ;;  %871 = vmatprep.subr.mxu1 %v196_v7 }
  0x1b   : > { %839 = vmatpush3.msra.mxu0 %v196_v7  ;;  %879 = vmatpush3.msra.mxu1 %v196_v7 }
  0x1c   : > { %840 = vmatprep.mubr.msk.f32.mxu0 %vm220_vm0, %v204_v8  ;;  %852 = vmatprep.mubr.msk.f32.mxu1 %vm220_vm0, %v212_v9 }
  0x1d   : > { %841 = vmatmul.mubr.msk.f32.vlgmr.msra.gmra.mxu0 %vm220_vm0, %v205_v10  ;;  %853 = vmatmul.mubr.msk.f32.vlgmr.msra.gmra.mxu1 %vm220_vm0, %v213_v11 }
  0x1e   : > { %843 = vmatprep.mubr.msk.f32.mxu0 %vm220_vm0, %v206_v12  ;;  %855 = vmatprep.mubr.msk.f32.mxu1 %vm220_vm0, %v214_v13 }
  0x21   : > { %844 = vmatmul.mubr.msk.f32.gmra.mxu0 %vm220_vm0, %v207_v14  ;;  %856 = vmatmul.mubr.msk.f32.gmra.mxu1 %vm220_vm0, %v215_v15 }
  0x22   : > { %846 = vmatprep.mubr.msk.f32.mxu0 %vm220_vm0, %v208_v16  ;;  %858 = vmatprep.mubr.msk.f32.mxu1 %vm220_vm0, %v216_v17 }
  0x25   : > { %847 = vmatmul.mubr.msk.f32.gmra.mxu0 %vm220_vm0, %v209_v18  ;;  %859 = vmatmul.mubr.msk.f32.gmra.mxu1 %vm220_vm0, %v217_v19 }
  0x26   : > { %849 = vmatprep.mubr.msk.f32.mxu0 %vm220_vm0, %v210_v20  ;;  %861 = vmatprep.mubr.msk.f32.mxu1 %vm220_vm0, %v218_v21 }
  0x29   : > { %850 = vmatmul.mubr.msk.f32.gmra.mxu0 %vm220_vm0, %v211_v22  ;;  %862 = vmatmul.mubr.msk.f32.gmra.mxu1 %vm220_vm0, %v219_v23 }
  0xdd   : > { %v1052_v24 = vpop.f32.mrf.mxu0  ;;  %v1054_v25 = vpop.f32.mrf.mxu1 }
  0xde   : > { %v431_v26 = vand.u32 2147483647, %v1052_v24  ;;  %v439_v27 = vand.u32 2147483647, %v1054_v25  ;;  %v415_v10 = vmax.f32 %v1052_v24, 0.0  ;;  %v423_v11 = vmax.f32 %v1054_v25, 0.0 }
  0xdf   : > { %v1058_v28 = vpop.f32.mrf.mxu0  ;;  %v1060_v29 = vpop.f32.mrf.mxu1 }
  0xe0   : > { %v447_v30 = vsub.f32 0.0, %v431_v26  ;;  %v455_v31 = vsub.f32 0.0, %v439_v27  ;;  %v430_v32 = vand.u32 2147483647, %v1058_v28  ;;  %v438_v33 = vand.u32 2147483647, %v1060_v29 }
  0xe1   : > { %v1064_v34 = vpop.f32.mrf.mxu0  ;;  %v1066_v35 = vpop.f32.mrf.mxu1  ;;  %v414_v12 = vmax.f32 %v1058_v28, 0.0  ;;  %v422_v15 = vmax.f32 %v1060_v29, 0.0 }
  0xe2   : > { %v464_v36 = vmul.f32 1.442695, %v447_v30  ;;  %v480_v37 = vmul.f32 1.442695, %v455_v31  ;;  %v446_v38 = vsub.f32 0.0, %v430_v32  ;;  %v454_v39 = vsub.f32 0.0, %v438_v33 }
  0xe3   : > { %v433_v40 = vand.u32 2147483647, %v1064_v34  ;;  %v441_v41 = vand.u32 2147483647, %v1066_v35  ;;  %v1070_v42 = vpop.f32.mrf.mxu0  ;;  %v1072_v43 = vpop.f32.mrf.mxu1  ;;  %v417_v16 = vmax.f32 %v1064_v34, 0.0  ;;  %v425_v20 = vmax.f32 %v1066_v35, 0.0 }
  0xe4   : > { %888 = vpow2.f32 %v464_v36  ;;  %v462_v44 = vmul.f32 1.442695, %v446_v38  ;;  %v432_v45 = vand.u32 2147483647, %v1070_v42  ;;  %v478_v46 = vmul.f32 1.442695, %v454_v39 }
  0xe5   : > { %890 = vpow2.f32 %v480_v37  ;;  %v449_v47 = vsub.f32 0.0, %v433_v40  ;;  %v457_v48 = vsub.f32 0.0, %v441_v41  ;;  %v1075_v49 = vpop.f32.mrf.mxu0  ;;  %v1077_v50 = vpop.f32.mrf.mxu1  ;;  %v440_v52 = vand.u32 2147483647, %v1072_v43 }
  0xe6   : > { %892 = vpow2.f32 %v462_v44  ;;  %v448_v51 = vsub.f32 0.0, %v432_v45  ;;  %v435_v58 = vand.u32 2147483647, %v1075_v49  ;;  %v443_v60 = vand.u32 2147483647, %v1077_v50 }
  0xe7   : > { %894 = vpow2.f32 %v478_v46  ;;  %v468_v53 = vmul.f32 1.442695, %v449_v47  ;;  %v484_v54 = vmul.f32 1.442695, %v457_v48  ;;  %v1080_v55 = vpop.f32.mrf.mxu0  ;;  %v456_v57 = vsub.f32 0.0, %v440_v52  ;;  %v1083_v59 = vpop.f32.mrf.mxu1 }
  0xe8   : > { %v466_v56 = vmul.f32 1.442695, %v448_v51  ;;  %v434_v61 = vand.u32 2147483647, %v1080_v55  ;;  %v451_v63 = vsub.f32 0.0, %v435_v58  ;;  %v459_v1 = vsub.f32 0.0, %v443_v60 }
  0xe9   : > { %896 = vpow2.f32 %v468_v53  ;;  %v482_v62 = vmul.f32 1.442695, %v456_v57  ;;  %v1087_v0 = vpop.f32.mrf.mxu0  ;;  %v442_v3 = vand.u32 2147483647, %v1083_v59  ;;  %v1091_v9 = vpop.f32.mrf.mxu1  ;;  %v416_v21 = vmax.f32 %v1070_v42, 0.0 }
  0xea   : > { %898 = vpow2.f32 %v484_v54  ;;  %v450_v2 = vsub.f32 0.0, %v434_v61  ;;  %v472_v4 = vmul.f32 1.442695, %v451_v63  ;;  %v488_v5 = vmul.f32 1.442695, %v459_v1 }
  0xeb   : > { %900 = vpow2.f32 %v466_v56  ;;  %v437_v6 = vand.u32 2147483647, %v1087_v0  ;;  %v458_v8 = vsub.f32 0.0, %v442_v3  ;;  %v1096_v13 = vpop.f32.mrf.mxu0  ;;  %v445_v22 = vand.u32 2147483647, %v1091_v9  ;;  %v1111_v37 = vpop.f32.mrf.mxu1  ;;  %v663_v3 = vld [vmem:[%s1160_s10 + $0x48] sm:$0xff] }
  0xec   : > { %902 = vpow2.f32 %v482_v62  ;;  %v470_v7 = vmul.f32 1.442695, %v450_v2  ;;  %v436_v30 = vand.u32 2147483647, %v1096_v13  ;;  %v424_v33 = vmax.f32 %v1072_v43, 0.0 }
  0xed   : > { %904 = vpow2.f32 %v472_v4  ;;  %v453_v17 = vsub.f32 0.0, %v437_v6  ;;  %v486_v27 = vmul.f32 1.442695, %v458_v8  ;;  %v419_v36 = vmax.f32 %v1075_v49, 0.0 }
  0xee   : > { %906 = vpow2.f32 %v488_v5  ;;  %v427_v45 = vmax.f32 %v1077_v50, 0.0  ;;  %v461_v46 = vsub.f32 0.0, %v445_v22  ;;  %v1115_v51 = vsub.f32 0.0, %v436_v30 }
  0xef   : > { %908 = vpow2.f32 %v470_v7  ;;  %v476_v40 = vmul.f32 1.442695, %v453_v17  ;;  %v444_v52 = vand.u32 2147483647, %v1111_v37 }
  0xf0   : > { %v1130_v6 = vmul.f32 1.442695, %v461_v46 }
  0xf1   : > { %v889_v14 = vpop.eup %888 }
  0xf2   : > { %v891_v18 = vpop.eup %890  ;;  %v503_v19 = vadd.f32 1.0, %v889_v14  ;;  %v506_v38 = vmul.f32 -0.5, %v889_v14  ;;  %v509_v48 = vand.u32 2147483647, %v889_v14 }
  0xf3   : > { %v1103_v23 = vpop.eup %892  ;;  %v575_v26 = vadd.f32 1.0, %v891_v18  ;;  %v578_v39 = vmul.f32 -0.5, %v891_v18  ;;  %v581_v54 = vand.u32 2147483647, %v891_v18 }
  0xf4   : > { %v1106_v31 = vpop.eup %894  ;;  %910 = vlog2.f32 %v503_v19  ;;  %v494_v32 = vadd.f32 1.0, %v1103_v23  ;;  %v497_v56 = vmul.f32 -0.5, %v1103_v23  ;;  %v507_v58 = vadd.f32 1.0, %v506_v38 }
  0xf5   : > { %912 = vlog2.f32 %v575_v26  ;;  %v566_v44 = vadd.f32 1.0, %v1106_v31  ;;  %v579_v60 = vadd.f32 1.0, %v578_v39  ;;  %v569_v61 = vmul.f32 -0.5, %v1106_v31 }
  0xf6   : > { %v897_v41 = vpop.eup %896  ;;  %914 = vlog2.f32 %v494_v32  ;;  %v500_v63 = vand.u32 2147483647, %v1103_v23  ;;  %vm1125_vm1 = vcmp.lt.f32.partialorder %v509_v48, 0.0004427343  ;;  %vm1134_vm2 = vcmp.lt.f32.partialorder %v581_v54, 0.0004427343 }
  0xf7   : > { %v899_v47 = vpop.eup %898  ;;  %916 = vpow2.f32 %v486_v27  ;;  %v521_v57 = vadd.f32 1.0, %v897_v41  ;;  %v524_v1 = vmul.f32 -0.5, %v897_v41  ;;  %v498_v17 = vadd.f32 1.0, %v497_v56 }
  0xf8   : > { %v1118_v53 = vpop.eup %900  ;;  %918 = vlog2.f32 %v566_v44  ;;  %v593_v2 = vadd.f32 1.0, %v899_v47  ;;  %v596_v4 = vmul.f32 -0.5, %v899_v47  ;;  %v572_v19 = vand.u32 2147483647, %v1106_v31 }
  0xf9   : > { %920 = vpow2.f32 %v476_v40  ;;  %v1122_v62 = vpop.eup %902  ;;  %v512_v5 = vadd.f32 1.0, %v1118_v53  ;;  %v515_v22 = vmul.f32 -0.5, %v1118_v53  ;;  %v508_v26 = vmul.f32 %v889_v14, %v507_v58 }
  0xfa   : > { %922 = vlog2.f32 %v521_v57  ;;  %v1132_v7 = vpop.eup %904  ;;  %v570_v27 = vadd.f32 1.0, %v569_v61  ;;  %v584_v30 = vadd.f32 1.0, %v1122_v62  ;;  %v580_v38 = vmul.f32 %v891_v18, %v579_v60 }
  0xfb   : > { %924 = vlog2.f32 %v593_v2  ;;  %v1141_v32 = vpop.eup %906  ;;  %vm1143_vm4 = vcmp.lt.f32.partialorder %v500_v63, 0.0004427343  ;;  %v525_v40 = vadd.f32 1.0, %v524_v1  ;;  %v527_v44 = vand.u32 2147483647, %v897_v41 }
  0xfc   : > { %926 = vlog2.f32 %v512_v5  ;;  %v597_v46 = vadd.f32 1.0, %v596_v4  ;;  %v599_v48 = vand.u32 2147483647, %v899_v47  ;;  %v539_v14 = vadd.f32 1.0, %v1132_v7  ;;  %v1148_v54 = vpop.eup %908 }
  0xfd   : > { %928 = vlog2.f32 %v584_v30  ;;  %v499_v56 = vmul.f32 %v1103_v23, %v498_v17  ;;  %vm1151_vm5 = vcmp.lt.f32.partialorder %v572_v19, 0.0004427343  ;;  %v516_v18 = vadd.f32 1.0, %v515_v22 }
  0xfe   : > { %v518_v58 = vand.u32 2147483647, %v1118_v53  ;;  %v571_v61 = vmul.f32 %v1106_v31, %v570_v27  ;;  %v587_v63 = vmul.f32 -0.5, %v1122_v62  ;;  %930 = vlog2.f32 %v539_v14 }
  0xff   : > { %v611_v23 = vadd.f32 1.0, %v1141_v32  ;;  %v526_v4 = vmul.f32 %v897_v41, %v525_v40  ;;  %vm1165_vm6 = vcmp.lt.f32.partialorder %v527_v44, 0.0004427343  ;;  %v590_v17 = vand.u32 2147483647, %v1122_v62  ;;  %v655_v40 = vld [vmem:[%s1160_s10 + $0x8] sm:$0xff] }
 0x100   : > { %v598_v30 = vmul.f32 %v899_v47, %v597_v46  ;;  %vm1170_vm7 = vcmp.lt.f32.partialorder %v599_v48, 0.0004427343  ;;  %v542_v27 = vmul.f32 -0.5, %v1132_v7  ;;  %vm1181_vm8 = vcmp.lt.f32.partialorder %v518_v58, 0.0004427343 }
 0x101   : > { %v911_v60 = vpop.eup %910  ;;  %932 = vlog2.f32 %v611_v23  ;;  %v530_v46 = vadd.f32 1.0, %v1148_v54  ;;  %vm1205_vm9 = vcmp.lt.f32.partialorder %v590_v17, 0.0004427343  ;;  %v614_v25 = vmul.f32 -0.5, %v1141_v32 }
 0x102   : > { %v913_v1 = vpop.eup %912  ;;  %v505_v2 = vmul.f32 0.6931472, %v911_v60  ;;  %v517_v60 = vmul.f32 %v1118_v53, %v516_v18 }
 0x103   : > { %v915_v19 = vpop.eup %914  ;;  %v577_v22 = vmul.f32 0.6931472, %v913_v1  ;;  %934 = vlog2.f32 %v530_v46 }
 0x104   : > { %v1175_v14 = vpop.eup %916  ;;  %v511_v41 = vsel %vm1125_vm1, %v508_v26, %v505_v2  ;;  %v496_v44 = vmul.f32 0.6931472, %v915_v19  ;;  %v588_v26 = vadd.f32 1.0, %v587_v63  ;;  %v545_v2 = vand.u32 2147483647, %v1132_v7 }
 0x105   : > { %v919_v48 = vpop.eup %918  ;;  %v639_v23 = vadd.f32 %v511_v41, %v415_v10  ;;  %v583_v1 = vsel %vm1134_vm2, %v580_v38, %v577_v22  ;;  %v654_v10 = vld [vmem:[%s1160_s10] sm:$0xff]  ;;  %v543_v22 = vadd.f32 1.0, %v542_v27  ;;  %v602_v41 = vadd.f32 1.0, %v1175_v14 }
 0x106   : > { %v1192_v19 = vpop.eup %920  ;;  %v647_v53 = vadd.f32 %v583_v1, %v423_v11  ;;  %v502_v24 = vsel %vm1143_vm4, %v499_v56, %v496_v44  ;;  %v568_v8 = vmul.f32 0.6931472, %v919_v48  ;;  %v662_v56 = vld [vmem:[%s1160_s10 + $0x40] sm:$0xff]  ;;  %v617_v27 = vand.u32 2147483647, %v1141_v32 }
 0x107   : > { %v923_v18 = vpop.eup %922  ;;  %v671_v58 = vmul.f32 %v655_v40, %v639_v23  ;;  %v638_v63 = vadd.f32 %v502_v24, %v414_v12  ;;  %v589_v12 = vmul.f32 %v1122_v62, %v588_v26  ;;  %v533_v23 = vmul.f32 -0.5, %v1148_v54  ;;  %v666_v1 = vld [vmem:[%s1160_s10 + $0x60] sm:$0xff] }
 0x108   : > { %v679_v11 = vmul.f32 %v663_v3, %v647_v53  ;;  %v574_v39 = vsel %vm1151_vm5, %v571_v61, %v568_v8  ;;  %v523_v17 = vmul.f32 0.6931472, %v923_v18  ;;  %v925_v44 = vpop.eup %924  ;;  %v657_v61 = vld [vmem:[%s1160_s10 + $0x18] sm:$0xff]  ;;  %936 = vlog2.f32 %v602_v41 }
 0x109   : > { %688 = vst.msk [vmem:[%s1198_s14 + $0x8] sm:$0xff] %vm686_vm3, %v671_v58  ;;  %v670_v40 = vmul.f32 %v654_v10, %v638_v63  ;;  %v646_v28 = vadd.f32 %v574_v39, %v422_v15  ;;  %v927_v46 = vpop.eup %926  ;;  %v595_v48 = vmul.f32 0.6931472, %v925_v44  ;;  %vm1232_vm10 = vcmp.lt.f32.partialorder %v545_v2, 0.0004427343  ;;  %v665_v3 = vld [vmem:[%s1160_s10 + $0x58] sm:$0xff] }
 0x10a   : > { %696 = vst.msk [vmem:[%s1198_s14 + $0x48] sm:$0xff] %vm686_vm3, %v679_v11  ;;  %v529_v57 = vsel %vm1165_vm6, %v526_v4, %v523_v17  ;;  %v514_v62 = vmul.f32 0.6931472, %v927_v46  ;;  %v929_v5 = vpop.eup %928  ;;  %v544_v26 = vmul.f32 %v1132_v7, %v543_v22  ;;  %v615_v53 = vadd.f32 1.0, %v614_v25  ;;  %v656_v10 = vld [vmem:[%s1160_s10 + $0x10] sm:$0xff]  ;;  %v659_v22 = vld [vmem:[%s1160_s10 + $0x28] sm:$0xff] }
 0x10b   : > { %687 = vst.msk [vmem:[%s1198_s14] sm:$0xff] %vm686_vm3, %v670_v40  ;;  %v678_v29 = vmul.f32 %v662_v56, %v646_v28  ;;  %v641_v15 = vadd.f32 %v529_v57, %v417_v16  ;;  %v601_v4 = vsel %vm1170_vm7, %v598_v30, %v595_v48  ;;  %v557_v24 = vadd.f32 1.0, %v1192_v19  ;;  %v931_v31 = vpop.eup %930  ;;  %v667_v44 = vld [vmem:[%s1160_s10 + $0x68] sm:$0xff]  ;;  %v658_v57 = vld [vmem:[%s1160_s10 + $0x20] sm:$0xff] }
 0x10c   : > { %v649_v16 = vadd.f32 %v601_v4, %v425_v20  ;;  %v520_v2 = vsel %vm1181_vm8, %v517_v60, %v514_v62  ;;  %v586_v30 = vmul.f32 0.6931472, %v929_v5  ;;  %vm1250_vm11 = vcmp.lt.f32.partialorder %v617_v27, 0.0004427343  ;;  %v664_v60 = vld [vmem:[%s1160_s10 + $0x50] sm:$0xff] }
 0x10d   : > { %695 = vst.msk [vmem:[%s1198_s14 + $0x40] sm:$0xff] %vm686_vm3, %v678_v29  ;;  %v673_v34 = vmul.f32 %v657_v61, %v641_v15  ;;  %v640_v7 = vadd.f32 %v520_v2, %v416_v21  ;;  %v534_v18 = vadd.f32 1.0, %v533_v23  ;;  %938 = vlog2.f32 %v557_v24 }
 0x10e   : > { %v681_v35 = vmul.f32 %v665_v3, %v649_v16  ;;  %v592_v20 = vsel %vm1205_vm9, %v589_v12, %v586_v30  ;;  %v541_v47 = vmul.f32 0.6931472, %v931_v31  ;;  %v605_v58 = vmul.f32 -0.5, %v1175_v14  ;;  %v933_v42 = vpop.eup %932 }
 0x10f   : > { %690 = vst.msk [vmem:[%s1198_s14 + $0x18] sm:$0xff] %vm686_vm3, %v673_v34  ;;  %v672_v21 = vmul.f32 %v656_v10, %v640_v7  ;;  %v648_v63 = vadd.f32 %v592_v20, %v424_v33  ;;  %v616_v25 = vmul.f32 %v1141_v32, %v615_v53  ;;  %940 = vpow2.f32 %v1130_v6  ;;  %v661_v34 = vld [vmem:[%s1160_s10 + $0x38] sm:$0xff] }
 0x110   : > { %698 = vst.msk [vmem:[%s1198_s14 + $0x58] sm:$0xff] %vm686_vm3, %v681_v35  ;;  %v547_v38 = vsel %vm1232_vm10, %v544_v26, %v541_v47  ;;  %v613_v11 = vmul.f32 0.6931472, %v933_v42  ;;  %v536_v39 = vand.u32 2147483647, %v1148_v54  ;;  %v535_v32 = vmul.f32 %v1148_v54, %v534_v18  ;;  %v935_v17 = vpop.eup %934 }
 0x111   : > { %v474_v56 = vmul.f32 1.442695, %v1115_v51  ;;  %689 = vst.msk [vmem:[%s1198_s14 + $0x10] sm:$0xff] %vm686_vm3, %v672_v21  ;;  %v680_v43 = vmul.f32 %v664_v60, %v648_v63  ;;  %v643_v33 = vadd.f32 %v547_v38, %v419_v36  ;;  %v460_v6 = vsub.f32 0.0, %v444_v52  ;;  %v669_v38 = vld [vmem:[%s1160_s10 + $0x78] sm:$0xff] }
 0x112   : > { %v619_v41 = vsel %vm1250_vm11, %v616_v25, %v613_v11  ;;  %v606_v40 = vadd.f32 1.0, %v605_v58  ;;  %v560_v51 = vmul.f32 -0.5, %v1192_v19  ;;  %v532_v54 = vmul.f32 0.6931472, %v935_v17 }
 0x113   : > { %942 = vpow2.f32 %v474_v56  ;;  %697 = vst.msk [vmem:[%s1198_s14 + $0x50] sm:$0xff] %vm686_vm3, %v680_v43  ;;  %v675_v49 = vmul.f32 %v659_v22, %v643_v33  ;;  %v651_v36 = vadd.f32 %v619_v41, %v427_v45  ;;  %v490_v28 = vmul.f32 1.442695, %v460_v6 }
 0x114   : > { %v418_v52 = vmax.f32 %v1080_v55, 0.0  ;;  %vm537_vm12 = vcmp.lt.f32.partialorder %v536_v39, 0.0004427343  ;;  %v608_v12 = vand.u32 2147483647, %v1175_v14  ;;  %v607_v45 = vmul.f32 %v1175_v14, %v606_v40 }
 0x115   : > { %692 = vst.msk [vmem:[%s1198_s14 + $0x28] sm:$0xff] %vm686_vm3, %v675_v49  ;;  %v683_v27 = vmul.f32 %v667_v44, %v651_v36  ;;  %v538_v46 = vsel %vm537_vm12, %v535_v32, %v532_v54  ;;  %944 = vpow2.f32 %v490_v28  ;;  %v937_v61 = vpop.eup %936  ;;  %v561_v23 = vadd.f32 1.0, %v560_v51  ;;  %v668_v28 = vld [vmem:[%s1160_s10 + $0x70] sm:$0xff] }
 0x116   : > { %v642_v48 = vadd.f32 %v538_v46, %v418_v52  ;;  %v604_v50 = vmul.f32 0.6931472, %v937_v61  ;;  %v426_v29 = vmax.f32 %v1083_v59, 0.0  ;;  %vm609_vm13 = vcmp.lt.f32.partialorder %v608_v12, 0.0004427343 }
 0x117   : > { %700 = vst.msk [vmem:[%s1198_s14 + $0x68] sm:$0xff] %vm686_vm3, %v683_v27  ;;  %v563_v15 = vand.u32 2147483647, %v1192_v19  ;;  %v562_v26 = vmul.f32 %v1192_v19, %v561_v23  ;;  %v421_v24 = vmax.f32 %v1087_v0, 0.0  ;;  %v429_v63 = vmax.f32 %v1091_v9, 0.0  ;;  %v660_v9 = vld [vmem:[%s1160_s10 + $0x30] sm:$0xff] }
 0x118   : > { %v674_v55 = vmul.f32 %v658_v57, %v642_v48  ;;  %v610_v62 = vsel %vm609_vm13, %v607_v45, %v604_v50  ;;  %v420_v32 = vmax.f32 %v1096_v13, 0.0  ;;  %v428_v49 = vmax.f32 %v1111_v37, 0.0 }
 0x119   : > { %v650_v4 = vadd.f32 %v610_v62, %v426_v29  ;;  %vm564_vm14 = vcmp.lt.f32.partialorder %v563_v15, 0.0004427343 }
 0x11a   : > { %v939_v5 = vpop.eup %938  ;;  %691 = vst.msk [vmem:[%s1198_s14 + $0x20] sm:$0xff] %vm686_vm3, %v674_v55 }
 0x11b   : > { %v559_v3 = vmul.f32 0.6931472, %v939_v5  ;;  %v682_v53 = vmul.f32 %v666_v1, %v650_v4 }
 0x11c   : > { %v941_v14 = vpop.eup %940 }
 0x11d   : > { %v565_v59 = vsel %vm564_vm14, %v562_v26, %v559_v3  ;;  %v629_v16 = vadd.f32 1.0, %v941_v14  ;;  %699 = vst.msk [vmem:[%s1198_s14 + $0x60] sm:$0xff] %vm686_vm3, %v682_v53  ;;  %v632_v8 = vmul.f32 -0.5, %v941_v14  ;;  %v635_v35 = vand.u32 2147483647, %v941_v14 }
 0x11e   : > { %v645_v2 = vadd.f32 %v565_v59, %v421_v24 }
 0x11f   : > { %946 = vlog2.f32 %v629_v16  ;;  %v633_v18 = vadd.f32 1.0, %v632_v8  ;;  %vm636_vm15 = vcmp.lt.f32.partialorder %v635_v35, 0.0004427343 }
 0x120   : > { %v943_v10 = vpop.eup %942  ;;  %v677_v30 = vmul.f32 %v661_v34, %v645_v2 }
 0x121   : > { %v548_v31 = vadd.f32 1.0, %v943_v10  ;;  %v551_v0 = vmul.f32 -0.5, %v943_v10  ;;  %v634_v42 = vmul.f32 %v941_v14, %v633_v18  ;;  %v554_v21 = vand.u32 2147483647, %v943_v10 }
 0x122   : > { %v945_v7 = vpop.eup %944  ;;  %694 = vst.msk [vmem:[%s1198_s14 + $0x38] sm:$0xff] %vm686_vm3, %v677_v30 }
 0x123   : > { %948 = vlog2.f32 %v548_v31  ;;  %v620_v19 = vadd.f32 1.0, %v945_v7  ;;  %v623_v20 = vmul.f32 -0.5, %v945_v7  ;;  %v552_v47 = vadd.f32 1.0, %v551_v0 }
 0x124   : > { %v626_v33 = vand.u32 2147483647, %v945_v7  ;;  %vm555_vm0 = vcmp.lt.f32.partialorder %v554_v21, 0.0004427343 }
 0x125   : > { %950 = vlog2.f32 %v620_v19  ;;  %v624_v11 = vadd.f32 1.0, %v623_v20  ;;  %v553_v43 = vmul.f32 %v943_v10, %v552_v47 }
 0x126   : > { %vm627_vm1 = vcmp.lt.f32.partialorder %v626_v33, 0.0004427343 }
 0x127   : > { %v625_v51 = vmul.f32 %v945_v7, %v624_v11 }
 0x12c   : > { %v947_v60 = vpop.eup %946 }
 0x12d   : > { %v631_v58 = vmul.f32 0.6931472, %v947_v60 }
 0x12f   : > { %v637_v25 = vsel %vm636_vm15, %v634_v42, %v631_v58 }
 0x130   : > { %v949_v22 = vpop.eup %948  ;;  %v653_v39 = vadd.f32 %v637_v25, %v429_v63 }
 0x131   : > { %v550_v56 = vmul.f32 0.6931472, %v949_v22 }
 0x132   : > { %v951_v6 = vpop.eup %950  ;;  %v685_v17 = vmul.f32 %v669_v38, %v653_v39 }
 0x133   : > { %v556_v41 = vsel %vm555_vm0, %v553_v43, %v550_v56  ;;  %v622_v40 = vmul.f32 0.6931472, %v951_v6 }
 0x134   : > { %v644_v44 = vadd.f32 %v556_v41, %v420_v32  ;;  %702 = vst.msk [vmem:[%s1198_s14 + $0x78] sm:$0xff] %vm686_vm3, %v685_v17 }
 0x135   : > { %v628_v54 = vsel %vm627_vm1, %v625_v51, %v622_v40 }
 0x136   : > { %v676_v36 = vmul.f32 %v660_v9, %v644_v44  ;;  %v652_v52 = vadd.f32 %v628_v54, %v428_v49 }
 0x138   : > { %693 = vst.msk [vmem:[%s1198_s14 + $0x30] sm:$0xff] %vm686_vm3, %v676_v36  ;;  %v684_v13 = vmul.f32 %v668_v28, %v652_v52 }
 0x13a   : > { %701 = vst.msk [vmem:[%s1198_s14 + $0x70] sm:$0xff] %vm686_vm3, %v684_v13 }
 0x13b PF: > { %s13_s12 = sadd.s32 1, %s958_s12  }
 0x13c   : > { %p10_p4 = scmp.ge.s32.totalorder %s13_s12, 6  }
 0x13e   :  { %12 = sbr.rel (!%p10_p4) target bundleno = 1 (0x1), region = 65 }

</bundles_post_ra>
